<compile_context>
chip_gen: v7x
topology: tpu7x:2x2x1
jax: 0.10.0
libtpu: 0.0.40
codegen_flags: <defaults>
</compile_context>

<pallas_src>
import jax
import jax.numpy as jnp
from jax.experimental import pallas as pl
from jax.experimental.pallas import tpu as pltpu

_LANES = 128


def _affine_kernel(x_ref, wb_ref, o_ref):
    # x_ref: (rows, 128) tile in VMEM
    # wb_ref: (2,) f32 in SMEM -- [conv weight, conv bias]
    # o_ref: (rows, 128) output tile (full, unmasked stores)
    w = wb_ref[0]
    b = wb_ref[1]
    o_ref[...] = (x_ref[...] * w + b).astype(o_ref.dtype)


def dummy_model_forward(x_nchw, weight, bias):
    """x_nchw: (N, 1, H, W); weight: (1, 1, 1, 1); bias: (1,)."""
    N, C, H, W = x_nchw.shape
    assert C == 1 and weight.shape == (1, 1, 1, 1) and bias.shape == (1,)
    dtype = x_nchw.dtype
    itemsize = jnp.dtype(dtype).itemsize
    total = N * C * H * W

    # Pack the two conv scalars into one SMEM operand.
    wb = jnp.stack([weight.reshape(()), bias.reshape(())]).astype(jnp.float32)

    # ---- Single-block fast path: whole problem in one VMEM-resident call ----
    if total % _LANES == 0 and total * itemsize <= 4 * 1024 * 1024:
        rows = total // _LANES
        x2d = x_nchw.reshape(rows, _LANES)  # free view; lane-dense, denser sublanes
        out = pl.pallas_call(
            _affine_kernel,
            out_shape=jax.ShapeDtypeStruct((rows, _LANES), dtype),
            in_specs=[
                pl.BlockSpec(memory_space=pltpu.MemorySpace.VMEM),  # full array
                pl.BlockSpec(memory_space=pltpu.MemorySpace.SMEM),  # packed scalars
            ],
            out_specs=pl.BlockSpec(memory_space=pltpu.MemorySpace.VMEM),
            input_output_aliases={0: 0},  # reuse x2d's HBM buffer for the output
        )(x2d, wb)
        return out.reshape(N, C, H, W)

    # ---- General tiled path (large inputs): row-tiled, parallel grid axis ----
    BLOCK_ROWS = 2048  # 2048*128*4B = 1 MiB f32 block; ~4 MiB with in+out dbl-buffer
    block_elems = BLOCK_ROWS * _LANES
    padded = pl.cdiv(total, block_elems) * block_elems
    x_flat = x_nchw.reshape(-1)
    if padded != total:
        x_flat = jnp.pad(x_flat, (0, padded - total))
    rows = padded // _LANES
    x2d = x_flat.reshape(rows, _LANES)

    out = pl.pallas_call(
        _affine_kernel,
        out_shape=jax.ShapeDtypeStruct((rows, _LANES), dtype),
        grid=(rows // BLOCK_ROWS,),
        in_specs=[
            pl.BlockSpec((BLOCK_ROWS, _LANES), lambda i: (i, 0)),
            pl.BlockSpec(memory_space=pltpu.MemorySpace.SMEM),
        ],
        out_specs=pl.BlockSpec((BLOCK_ROWS, _LANES), lambda i: (i, 0)),
        input_output_aliases={0: 0},
        compiler_params=pltpu.CompilerParams(
            dimension_semantics=("parallel",),      # shards across v7x's 2 TCs
            vmem_limit_bytes=64 * 1024 * 1024,      # headroom over 16/32 MiB defaults
        ),
    )(x2d, wb)
    return out.reshape(-1)[:total].reshape(N, C, H, W)


def reference_forward(x_nchw, weight, bias):
    # Pure-JAX reference: Conv2d(1, 1, 1) == scalar scale + bias, shape-preserving.
    return x_nchw * weight[0, 0, 0, 0] + bias[0]


if __name__ == "__main__":
    # Conv2d(1, 1, 1) forces a single input channel.
    N, C, H, W = 2, 1, 16, 16

    key = jax.random.PRNGKey(0)
    kx, kw, kb = jax.random.split(key, 3)

    x = jax.random.normal(kx, (N, C, H, W), dtype=jnp.float32)
    # Deterministic "conv" parameters (shapes from torch.nn.Conv2d(1, 1, 1))
    weight = jax.random.normal(kw, (1, 1, 1, 1), dtype=jnp.float32) * 0.5
    bias = jax.random.normal(kb, (1,), dtype=jnp.float32) * 0.1

    ref = reference_forward(x, weight, bias)

    out = dummy_model_forward(x, weight, bias)
    out = jax.block_until_ready(out)

    assert out.shape == (N, C, H, W)
    assert out.dtype == x.dtype
    assert jnp.allclose(out, ref, atol=1e-6, rtol=1e-6), (out, ref)

    print("KERNEL_OK")
</pallas_src>

<mosaic_0001>
module attributes {stable_mosaic.version = 11 : i64} {
  func.func @_affine_kernel(%arg0: memref<4x128xf32, #tpu.memory_space<vmem>>, %arg1: memref<2xf32, #tpu.memory_space<smem>>, %arg2: memref<4x128xf32, #tpu.memory_space<vmem>>) attributes {dimension_semantics = [], scalar_prefetch = 0 : i64, scratch_operands = 0 : i64, tpu.core_type = #tpu.core_type<tc>} {
    %c0 = arith.constant 0 : index
    %0 = memref.load %arg1[%c0] : memref<2xf32, #tpu.memory_space<smem>>
    %c1 = arith.constant 1 : index
    %1 = memref.load %arg1[%c1] : memref<2xf32, #tpu.memory_space<smem>>
    %c0_0 = arith.constant 0 : index
    %c0_1 = arith.constant 0 : index
    %2 = vector.load %arg0[%c0_0, %c0_1] : memref<4x128xf32, #tpu.memory_space<vmem>>, vector<4x128xf32>
    %3 = vector.broadcast %0 : f32 to vector<4x128xf32>
    %4 = arith.mulf %2, %3 : vector<4x128xf32>
    %5 = vector.broadcast %1 : f32 to vector<4x128xf32>
    %6 = arith.addf %4, %5 : vector<4x128xf32>
    %c0_2 = arith.constant 0 : index
    %c0_3 = arith.constant 0 : index
    %7 = vector.load %arg2[%c0_2, %c0_3] : memref<4x128xf32, #tpu.memory_space<vmem>>, vector<4x128xf32>
    tpu.vector_store %arg2[%c0_2, %c0_3], %6 {strides = array<i32>} : memref<4x128xf32, #tpu.memory_space<vmem>>, vector<4x128xf32>,
    return
  }
}

</mosaic_0001>

<bundles_post_ra>
// kernel: tpu_custom_call.1
= control target key start
LH: loop header
LB: loop body
LE: loop exit
PB: predicated region body
PF: predicated region fallthrough
CT: control target
= control target key end

     0   :  { %7 = vsyncpa [#allocation3], 0  ;;  %s172_s0 = inlined_call_operand.hbm [shape: f32[4,128], index: 0, kind: input, shape index: {}, may-alias: {0,2}]   ;;  %s173_s1 = inlined_call_operand.vmem [shape: f32[2], index: 1, kind: input, shape index: {}]   ;;  %s174_s2 = inlined_call_operand.hbm [shape: f32[4,128], index: 2, kind: output, shape index: {}, may-alias: {0,2}]  }
   0x1   :  { %8 = vsyncpa [#allocation5], 0 }
   0x2   :  { %9 = vsyncpa [#allocation4], 0  ;;  %s26_s11 = sshll.u32 %s173_s1, 4  ;;  %s127_s12 = smov [#allocation2]   ;;  %s27_s11 = int_to_ptr.vmem [resolvable:$true] %s26_s11 }
   0x3   :  { %s16_s13 = sshll.u32 %s127_s12, 4  ;;  %s65_s16 = scalar_lea.hbm %s172_s0, 64  ;;  %s17_s13 = int_to_ptr.vmem [resolvable:$true] %s16_s13 }
   0x4   :  { %p66_p0 = scmp.ne.s32.totalorder %s172_s0, %s65_s16  ;;  %p69_p1 = scmp.lt.u32.totalorder %s65_s16, %s172_s0 }
   0x6   :  { %p71_p2 = pnand %p69_p1, %p66_p0 }
   0x8   :  { %74 = shalt.err (!%p71_p2)
}
   0x9   :  { %s75_s21 = scalar_lea.vmem %s17_s13, 64  ;;  %p80_p4 = scmp.lt.s32.totalorder %s17_s13, %s17_s13 }
   0xa   :  { %p76_p3 = scmp.ne.s32.totalorder %s17_s13, %s75_s21  ;;  %p81_p5 = scmp.lt.s32.totalorder %s75_s21, %s75_s21 }
   0xc   :  { %p82_p6 = por %p81_p5, %p80_p4 }
   0xe   :  { %p83_p7 = pnand %p82_p6, %p76_p3 }
  0x10   :  { %86 = shalt.err (!%p83_p7)
}
  0x11   :  { %19 = dma.hbm_to_vmem [thread:$0]  %s172_s0, 64, %s17_s13, [#allocation3]  }
  0x12   :  { %s87_s23 = scalar_lea.vmem %s27_s11, 16  ;;  %p92_p9 = scmp.lt.s32.totalorder %s27_s11, %s27_s11 }
  0x13   :  { %p88_p8 = scmp.ne.s32.totalorder %s27_s11, %s87_s23  ;;  %p93_p10 = scmp.lt.s32.totalorder %s87_s23, %s87_s23 }
  0x15   :  { %p94_p11 = por %p93_p10, %p92_p9 }
  0x17   :  { %p95_p12 = pnand %p94_p11, %p88_p8 }
  0x19   :  { %98 = shalt.err (!%p95_p12)
}
  0x1a   :  { %s128_s24 = smov [#allocation6]  }
  0x1b   :  { %29 = dma.vmem_to_smem %s27_s11, 16, %s128_s24, [#allocation5]  }
  0x1c   :  { %121 = dma.done.wait [#allocation3], 64  }
  0x1d   :  { %122 = vsyncadd [#allocation3], 4294967232 }
  0x1e   :  { %123 = dma.done.wait [#allocation5], 16  }
  0x1f   :  { %124 = vsyncadd [#allocation5], 4294967280 }
  0x20   :  { %36 = sfence }
  0x21   :  { %s37_s25 = sld [smem:[#allocation6]]  ;;  %s61_s26 = sld [smem:[#allocation6 + $0x1]]  ;;  %v39_v0 = vld [vmem:[#allocation2] sm:$0xf] }
  0x22   :  { %s129_s0 = smov [#allocation7]  }
  0x23   :  { %s51_s27 = sshll.u32 %s129_s0, 4  ;;  %s52_s27 = int_to_ptr.vmem [resolvable:$true] %s51_s27 }
  0x24   :  { %s99_s28 = scalar_lea.vmem %s52_s27, 64  ;;  %p104_p0 = scmp.lt.s32.totalorder %s52_s27, %s52_s27 }
  0x25   :  { %p100_p13 = scmp.ne.s32.totalorder %s52_s27, %s99_s28  ;;  %p105_p1 = scmp.lt.s32.totalorder %s99_s28, %s99_s28 }
  0x27   :  { %v40_v1 = vstv %s37_s25  ;;  %v42_v2 = vstv %s61_s26  ;;  %p106_p2 = por %p105_p1, %p104_p0 }
  0x28   :  { %v41_v3 = vmul.f32 %v40_v1, %v39_v0 }
  0x29   :  { %p107_p3 = pnand %p106_p2, %p100_p13 }
  0x2a   :  { %v43_v4 = vadd.f32 %v42_v2, %v41_v3 }
  0x2c   :  { %44 = vst [vmem:[#allocation7] sm:$0xf] %v43_v4 }
  0x2d   :  { %110 = shalt.err (!%p107_p3)
}
  0x2e   :  { %s111_s3 = scalar_lea.hbm %s174_s2, 64 }
  0x2f   :  { %p112_p4 = scmp.ne.s32.totalorder %s174_s2, %s111_s3  ;;  %p115_p5 = scmp.lt.u32.totalorder %s111_s3, %s174_s2 }
  0x31   :  { %p117_p6 = pnand %p115_p5, %p112_p4 }
  0x33   :  { %120 = shalt.err (!%p117_p6)
}
  0x34   :  { %54 = dma.vmem_to_hbm [thread:$0]  %s52_s27, 64, %s174_s2, [#allocation4]  }
  0x35   :  { %125 = dma.done.wait [#allocation4], 64  }
  0x36   :  { %126 = vsyncadd [#allocation4], 4294967232 }
  0x37   :  { %58 = vsyncpa [#allocation3], 1 }
  0x38   :  { %59 = vsyncpa [#allocation4], 1 }
  0x39   :  { %60 = vsyncpa [#allocation5], 1 }

</bundles_post_ra>
